<compile_context>
chip_gen: v7x
topology: tpu7x:2x2x1
jax: 0.10.0
libtpu: 0.0.40
codegen_flags: <defaults>
</compile_context>

<pallas_src>
import functools

import jax
import jax.numpy as jnp
from jax import lax
from jax.experimental import pallas as pl
from jax.experimental.pallas import tpu as pltpu


def _round_up(value, multiple):
    return (value + multiple - 1) // multiple * multiple


# ----------------------------------------------------------------------------
# Kernel 1: resident weights — whole L-block chain per row tile, weights stay
# in VMEM across the entire row grid (single-buffered; constant index_map).
# ----------------------------------------------------------------------------
def _rev_seq_resident_kernel(x_ref, wf_ref, bf_ref, wg_ref, bg_ref, y_ref, *,
                             num_blocks, feat):
    # Ref-sliced half loads: no (tile, 2*feat) temporary.
    x1 = x_ref[:, :feat].astype(jnp.float32)
    x2 = x_ref[:, feat:].astype(jnp.float32)

    def block_step(l, carry):
        x1, x2 = carry
        wf = wf_ref[l]                     # (feat, feat), compute dtype
        wg = wg_ref[l]
        # MXU matmuls in the weight dtype with f32 accumulation; residual adds
        # stay f32 so the reversible algebra is preserved.
        y1 = x1 + jnp.dot(x2.astype(wf.dtype), wf,
                          preferred_element_type=jnp.float32) + bf_ref[l]
        y2 = x2 + jnp.dot(y1.astype(wg.dtype), wg,
                          preferred_element_type=jnp.float32) + bg_ref[l]
        return y1, y2

    if num_blocks <= 4:
        # Shallow stacks: static unroll (best LLO scheduling, few live temps).
        for l in range(num_blocks):
            x1, x2 = block_step(l, (x1, x2))
    else:
        # Deeper stacks: a real loop bounds vreg/VMEM live ranges & code size.
        x1, x2 = lax.fori_loop(0, num_blocks, block_step, (x1, x2))

    # Two half-width stores; unmasked full-lane vst when feat % 128 == 0.
    y_ref[:, :feat] = x1.astype(y_ref.dtype)
    y_ref[:, feat:] = x2.astype(y_ref.dtype)


# ----------------------------------------------------------------------------
# Kernel 2: weight streaming — grid = (row_tiles, L), block axis innermost and
# 'arbitrary'; x1/x2 carried in VMEM scratch, per-block weights double-buffered.
# Used when resident weights would not fit the per-TC VMEM budget (e.g. v7x).
# ----------------------------------------------------------------------------
def _rev_seq_stream_kernel(x_ref, wf_ref, bf_ref, wg_ref, bg_ref, y_ref,
                           x1_sc, x2_sc, *, feat):
    l = pl.program_id(1)

    @pl.when(l == 0)
    def _():
        x1_sc[...] = x_ref[:, :feat].astype(jnp.float32)
        x2_sc[...] = x_ref[:, feat:].astype(jnp.float32)

    wf = wf_ref[0]                          # (feat, feat)
    wg = wg_ref[0]
    x1 = x1_sc[...]
    x2 = x2_sc[...]
    y1 = x1 + jnp.dot(x2.astype(wf.dtype), wf,
                      preferred_element_type=jnp.float32) + bf_ref[0]
    y2 = x2 + jnp.dot(y1.astype(wg.dtype), wg,
                      preferred_element_type=jnp.float32) + bg_ref[0]
    x1_sc[...] = y1
    x2_sc[...] = y2

    @pl.when(l == pl.num_programs(1) - 1)
    def _():
        y_ref[:, :feat] = y1.astype(y_ref.dtype)
        y_ref[:, feat:] = y2.astype(y_ref.dtype)


# ----------------------------------------------------------------------------
# Wrapper
# ----------------------------------------------------------------------------
def reversible_sequence_forward(x, wf, bf, wg, bg, *, row_tile=512,
                                compute_dtype=jnp.bfloat16, pad_lanes=True,
                                force_stream=None):
    """Forward pass of ReversibleSequence with Linear f/g blocks.

    x : (B, N, 2*D); wf, wg : (L, D, D) laid out for x @ W; bf, bg : (L, D).
    Returns (B, N, 2*D) in x.dtype.
    """
    B, N, two_d = x.shape
    D = two_d // 2
    assert two_d == 2 * D
    L = wf.shape[0]
    rows = B * N

    # ---- optional lane-dense feature padding (exact: zero pad) -------------
    Dp = _round_up(D, 128) if (pad_lanes and D % 128 != 0) else D
    if Dp != D:
        # Pad each half of the feature axis to a multiple of 128 so every half
        # store in the kernel is an unmasked full-lane vst.  (Only triggers for
        # small / non-multiple-of-128 D; costs one boundary copy.)
        x3 = jnp.pad(x.reshape(rows, 2, D), ((0, 0), (0, 0), (0, Dp - D)))
        x2d = x3.reshape(rows, 2 * Dp)
        pad_w = ((0, 0), (0, Dp - D), (0, Dp - D))
        wf_p = jnp.pad(wf, pad_w)
        wg_p = jnp.pad(wg, pad_w)
        bf_p = jnp.pad(bf, ((0, 0), (0, Dp - D)))
        bg_p = jnp.pad(bg, ((0, 0), (0, Dp - D)))
    else:
        x2d = x.reshape(rows, 2 * D)                 # free, row-major view
        wf_p, wg_p, bf_p, bg_p = wf, wg, bf, bg

    # ---- row tile: multiple of 8, no row padding, >=2 grid steps if possible
    tile = max(8, (min(row_tile, rows) // 8) * 8)
    if rows < 2 * tile and rows >= 16:
        tile = max(8, ((rows // 2) // 8) * 8)        # v7x megacore: >=2 tiles
    num_tiles = pl.cdiv(rows, tile)                  # ragged last tile is OK
    grid_rows = int(num_tiles)

    # ---- params in compute dtype --------------------------------------------
    wf_c = wf_p.astype(compute_dtype)
    wg_c = wg_p.astype(compute_dtype)
    bf3 = bf_p.reshape(L, 1, Dp).astype(jnp.float32)
    bg3 = bg_p.reshape(L, 1, Dp).astype(jnp.float32)

    # ---- per-generation VMEM budget -----------------------------------------
    try:
        phys_vmem = int(pltpu.get_tpu_info().vmem_capacity_bytes)
    except Exception:
        phys_vmem = 128 * 1024 * 1024
    vmem_cap = int(0.85 * phys_vmem)                 # leave Mosaic headroom

    isz_w = jnp.dtype(compute_dtype).itemsize
    isz_x = jnp.dtype(x.dtype).itemsize
    weight_bytes = 2 * L * Dp * Dp * isz_w           # wf + wg, single copy
    bias_bytes = 2 * L * 8 * Dp * 4                  # (1, Dp) pads to 8 sublanes
    io_bytes = 2 * 2 * tile * (2 * Dp) * isz_x       # x + y tiles, double-buffered
    tmp_bytes = 6 * tile * Dp * 4                    # f32 x1/x2/y1/y2 + mm temps
    resident_need = weight_bytes + bias_bytes + io_bytes + tmp_bytes
    stream_need = (2 * 2 * (Dp * Dp * isz_w + 8 * Dp * 4)   # 2 bufs, f+g blocks
                   + io_bytes + 2 * tile * Dp * 4 + tmp_bytes)

    use_stream = (resident_need > int(0.7 * vmem_cap)) if force_stream is None \
        else bool(force_stream)
    need = stream_need if use_stream else resident_need
    vmem_limit = int(min(vmem_cap, max(32 * 1024 * 1024, int(1.25 * need))))

    flops = 4 * L * rows * Dp * Dp + 4 * L * rows * Dp
    act_bytes = 2 * rows * (2 * Dp) * isz_x

    if not use_stream:
        # Weights/biases resident with a constant index_map: a single pipeline
        # buffer (no second copy) — half the resident weight VMEM.
        resident = dict(pipeline_mode=pl.Buffered(1))
        kernel = functools.partial(_rev_seq_resident_kernel,
                                   num_blocks=L, feat=Dp)
        cost = pl.CostEstimate(
            flops=flops, transcendentals=0,
            bytes_accessed=act_bytes + weight_bytes + 2 * L * Dp * 4)
        y2d = pl.pallas_call(
            kernel,
            out_shape=jax.ShapeDtypeStruct((rows, 2 * Dp), x.dtype),
            grid_spec=pltpu.PrefetchScalarGridSpec(
                num_scalar_prefetch=0,
                grid=(grid_rows,),
                in_specs=[
                    pl.BlockSpec((tile, 2 * Dp), lambda i: (i, 0)),
                    pl.BlockSpec((L, Dp, Dp), lambda i: (0, 0, 0), **resident),
                    pl.BlockSpec((L, 1, Dp), lambda i: (0, 0, 0), **resident),
                    pl.BlockSpec((L, Dp, Dp), lambda i: (0, 0, 0), **resident),
                    pl.BlockSpec((L, 1, Dp), lambda i: (0, 0, 0), **resident),
                ],
                out_specs=pl.BlockSpec((tile, 2 * Dp), lambda i: (i, 0)),
            ),
            compiler_params=pltpu.CompilerParams(
                dimension_semantics=("parallel",),
                vmem_limit_bytes=vmem_limit),
            cost_estimate=cost,
        )(x2d, wf_c, bf3, wg_c, bg3)
    else:
        # Weight streaming: block axis innermost + 'arbitrary'; x / y blocks are
        # constant over it (fetched/written once per row tile), weights stream
        # with the default double-buffered DMA.
        kernel = functools.partial(_rev_seq_stream_kernel, feat=Dp)
        cost = pl.CostEstimate(
            flops=flops, transcendentals=0,
            bytes_accessed=act_bytes + grid_rows * (weight_bytes + bias_bytes))
        y2d = pl.pallas_call(
            kernel,
            out_shape=jax.ShapeDtypeStruct((rows, 2 * Dp), x.dtype),
            grid_spec=pltpu.PrefetchScalarGridSpec(
                num_scalar_prefetch=0,
                grid=(grid_rows, L),
                in_specs=[
                    pl.BlockSpec((tile, 2 * Dp), lambda i, l: (i, 0)),
                    pl.BlockSpec((1, Dp, Dp), lambda i, l: (l, 0, 0)),
                    pl.BlockSpec((1, 1, Dp), lambda i, l: (l, 0, 0)),
                    pl.BlockSpec((1, Dp, Dp), lambda i, l: (l, 0, 0)),
                    pl.BlockSpec((1, 1, Dp), lambda i, l: (l, 0, 0)),
                ],
                out_specs=pl.BlockSpec((tile, 2 * Dp), lambda i, l: (i, 0)),
                scratch_shapes=[pltpu.VMEM((tile, Dp), jnp.float32),
                                pltpu.VMEM((tile, Dp), jnp.float32)],
            ),
            compiler_params=pltpu.CompilerParams(
                dimension_semantics=("parallel", "arbitrary"),
                vmem_limit_bytes=vmem_limit),
            cost_estimate=cost,
        )(x2d, wf_c, bf3, wg_c, bg3)

    if Dp != D:
        return y2d.reshape(rows, 2, Dp)[:, :, :D].reshape(B, N, two_d)
    return y2d.reshape(B, N, two_d)


def reference_forward(x, wf, bf, wg, bg):
    """Pure-JAX f32 reference of the PyTorch forward."""
    D = x.shape[-1] // 2
    x1 = x[..., :D].astype(jnp.float32)
    x2 = x[..., D:].astype(jnp.float32)
    for l in range(wf.shape[0]):
        y1 = x1 + jnp.einsum("bnd,de->bne", x2, wf[l]) + bf[l]
        y2 = x2 + jnp.einsum("bnd,de->bne", y1, wg[l]) + bg[l]
        x1, x2 = y1, y2
    return jnp.concatenate([x1, x2], axis=-1).astype(x.dtype)


if __name__ == "__main__":
    # Small shapes consistent with the module: x is (batch, seq, 2*dim).
    B, N, D, L = 2, 8, 32, 2          # 2 reversible blocks, hidden dim 32/half

    key = jax.random.PRNGKey(0)
    kx, kwf, kbf, kwg, kbg = jax.random.split(key, 5)

    x = jax.random.normal(kx, (B, N, 2 * D), dtype=jnp.float32)
    # Deterministic per-block Linear(dim, dim) params (laid out for x @ W).
    wf = 0.1 * jax.random.normal(kwf, (L, D, D), dtype=jnp.float32)
    bf = 0.1 * jax.random.normal(kbf, (L, D), dtype=jnp.float32)
    wg = 0.1 * jax.random.normal(kwg, (L, D, D), dtype=jnp.float32)
    bg = 0.1 * jax.random.normal(kbg, (L, D), dtype=jnp.float32)

    ref = reference_forward(x, wf, bf, wg, bg)

    # Exact-algebra check: f32-weight resident path matches the f32 reference.
    out_f32 = jax.block_until_ready(
        reversible_sequence_forward(x, wf, bf, wg, bg,
                                    compute_dtype=jnp.float32))
    assert out_f32.shape == (B, N, 2 * D), out_f32.shape
    assert jnp.allclose(out_f32, ref, atol=1e-5, rtol=1e-5), \
        float(jnp.max(jnp.abs(out_f32 - ref)))

    # Production path: bf16 weights on the MXU, f32 residual accumulation.
    out = jax.block_until_ready(reversible_sequence_forward(x, wf, bf, wg, bg))
    assert out.shape == (B, N, 2 * D), out.shape
    assert jnp.allclose(out, ref, atol=5e-2, rtol=5e-2), \
        float(jnp.max(jnp.abs(out - ref)))

    # Weight-streaming fallback (the v7x large-weight path), forced here so it
    # is exercised; f32 weights keep the check exact.
    out_stream = jax.block_until_ready(
        reversible_sequence_forward(x, wf, bf, wg, bg,
                                    compute_dtype=jnp.float32,
                                    force_stream=True))
    assert out_stream.shape == (B, N, 2 * D), out_stream.shape
    assert jnp.allclose(out_stream, ref, atol=1e-5, rtol=1e-5), \
        float(jnp.max(jnp.abs(out_stream - ref)))

    # TODO(synk): backward_pass / _ReversibleFunction (activation-recomputing
    # autograd), training-time layer_dropout and Deterministic RNG record/set
    # are autograd / train-mode machinery, not forward compute; omitted here.
    print("KERNEL_OK")
</pallas_src>

<mosaic_0001>
module attributes {stable_mosaic.version = 11 : i64} {
  func.func @_rev_seq_resident_kernel(%arg0: i32, %arg1: memref<8x256xf32, #tpu.memory_space<vmem>>, %arg2: memref<2x128x128xf32, #tpu.memory_space<vmem>>, %arg3: memref<2x1x128xf32, #tpu.memory_space<vmem>>, %arg4: memref<2x128x128xf32, #tpu.memory_space<vmem>>, %arg5: memref<2x1x128xf32, #tpu.memory_space<vmem>>, %arg6: memref<8x256xf32, #tpu.memory_space<vmem>>) attributes {dimension_semantics = [#tpu.dimension_semantics<parallel>], iteration_bounds = array<i64: 2>, scalar_prefetch = 0 : i64, scratch_operands = 0 : i64, tpu.core_type = #tpu.core_type<tc>, window_params = [{transform_indices = @transform_0, window_bounds = array<i64: 8, 256>}, {pipeline_mode = #tpu.pipeline_mode<synchronous>, transform_indices = @transform_1, window_bounds = array<i64: 2, 128, 128>}, {pipeline_mode = #tpu.pipeline_mode<synchronous>, transform_indices = @transform_2, window_bounds = array<i64: 2, 1, 128>}, {pipeline_mode = #tpu.pipeline_mode<synchronous>, transform_indices = @transform_3, window_bounds = array<i64: 2, 128, 128>}, {pipeline_mode = #tpu.pipeline_mode<synchronous>, transform_indices = @transform_4, window_bounds = array<i64: 2, 1, 128>}, {transform_indices = @transform_5, window_bounds = array<i64: 8, 256>}]} {
    %c0 = arith.constant 0 : index
    %c0_0 = arith.constant 0 : index
    %0 = vector.load %arg1[%c0, %c0_0] : memref<8x256xf32, #tpu.memory_space<vmem>>, vector<8x128xf32>
    %c0_1 = arith.constant 0 : index
    %c128 = arith.constant 128 : index
    %1 = vector.load %arg1[%c0_1, %c128] : memref<8x256xf32, #tpu.memory_space<vmem>>, vector<8x128xf32>
    %c0_2 = arith.constant 0 : index
    %c0_3 = arith.constant 0 : index
    %c0_4 = arith.constant 0 : index
    %2 = vector.load %arg2[%c0_2, %c0_3, %c0_4] : memref<2x128x128xf32, #tpu.memory_space<vmem>>, vector<1x128x128xf32>
    %3 = vector.shape_cast %2 : vector<1x128x128xf32> to vector<128x128xf32>
    %c0_5 = arith.constant 0 : index
    %c0_6 = arith.constant 0 : index
    %c0_7 = arith.constant 0 : index
    %4 = vector.load %arg4[%c0_5, %c0_6, %c0_7] : memref<2x128x128xf32, #tpu.memory_space<vmem>>, vector<1x128x128xf32>
    %5 = vector.shape_cast %4 : vector<1x128x128xf32> to vector<128x128xf32>
    %cst = arith.constant dense<0.000000e+00> : vector<8x128xf32>
    %6 = tpu.matmul %1, %3, %cst {dimension_numbers = #tpu.dot_dimension_numbers<[1], [0], [0], [1], [0, 0, 1, 1], [], []>} : vector<8x128xf32>, vector<128x128xf32>, vector<8x128xf32> -> vector<8x128xf32>
    %7 = arith.addf %0, %6 : vector<8x128xf32>
    %c0_8 = arith.constant 0 : index
    %c0_9 = arith.constant 0 : index
    %c0_10 = arith.constant 0 : index
    %8 = vector.load %arg3[%c0_8, %c0_9, %c0_10] : memref<2x1x128xf32, #tpu.memory_space<vmem>>, vector<1x1x128xf32>
    %9 = vector.shape_cast %8 : vector<1x1x128xf32> to vector<1x128xf32>
    %10 = vector.broadcast %9 : vector<1x128xf32> to vector<8x128xf32>
    %11 = arith.addf %7, %10 : vector<8x128xf32>
    %cst_11 = arith.constant dense<0.000000e+00> : vector<8x128xf32>
    %12 = tpu.matmul %11, %5, %cst_11 {dimension_numbers = #tpu.dot_dimension_numbers<[1], [0], [0], [1], [0, 0, 1, 1], [], []>} : vector<8x128xf32>, vector<128x128xf32>, vector<8x128xf32> -> vector<8x128xf32>
    %13 = arith.addf %1, %12 : vector<8x128xf32>
    %c0_12 = arith.constant 0 : index
    %c0_13 = arith.constant 0 : index
    %c0_14 = arith.constant 0 : index
    %14 = vector.load %arg5[%c0_12, %c0_13, %c0_14] : memref<2x1x128xf32, #tpu.memory_space<vmem>>, vector<1x1x128xf32>
    %15 = vector.shape_cast %14 : vector<1x1x128xf32> to vector<1x128xf32>
    %16 = vector.broadcast %15 : vector<1x128xf32> to vector<8x128xf32>
    %17 = arith.addf %13, %16 : vector<8x128xf32>
    %c1 = arith.constant 1 : index
    %c0_15 = arith.constant 0 : index
    %c0_16 = arith.constant 0 : index
    %18 = vector.load %arg2[%c1, %c0_15, %c0_16] : memref<2x128x128xf32, #tpu.memory_space<vmem>>, vector<1x128x128xf32>
    %19 = vector.shape_cast %18 : vector<1x128x128xf32> to vector<128x128xf32>
    %c1_17 = arith.constant 1 : index
    %c0_18 = arith.constant 0 : index
    %c0_19 = arith.constant 0 : index
    %20 = vector.load %arg4[%c1_17, %c0_18, %c0_19] : memref<2x128x128xf32, #tpu.memory_space<vmem>>, vector<1x128x128xf32>
    %21 = vector.shape_cast %20 : vector<1x128x128xf32> to vector<128x128xf32>
    %cst_20 = arith.constant dense<0.000000e+00> : vector<8x128xf32>
    %22 = tpu.matmul %17, %19, %cst_20 {dimension_numbers = #tpu.dot_dimension_numbers<[1], [0], [0], [1], [0, 0, 1, 1], [], []>} : vector<8x128xf32>, vector<128x128xf32>, vector<8x128xf32> -> vector<8x128xf32>
    %23 = arith.addf %11, %22 : vector<8x128xf32>
    %c1_21 = arith.constant 1 : index
    %c0_22 = arith.constant 0 : index
    %c0_23 = arith.constant 0 : index
    %24 = vector.load %arg3[%c1_21, %c0_22, %c0_23] : memref<2x1x128xf32, #tpu.memory_space<vmem>>, vector<1x1x128xf32>
    %25 = vector.shape_cast %24 : vector<1x1x128xf32> to vector<1x128xf32>
    %26 = vector.broadcast %25 : vector<1x128xf32> to vector<8x128xf32>
    %27 = arith.addf %23, %26 : vector<8x128xf32>
    %cst_24 = arith.constant dense<0.000000e+00> : vector<8x128xf32>
    %28 = tpu.matmul %27, %21, %cst_24 {dimension_numbers = #tpu.dot_dimension_numbers<[1], [0], [0], [1], [0, 0, 1, 1], [], []>} : vector<8x128xf32>, vector<128x128xf32>, vector<8x128xf32> -> vector<8x128xf32>
    %29 = arith.addf %17, %28 : vector<8x128xf32>
    %c1_25 = arith.constant 1 : index
    %c0_26 = arith.constant 0 : index
    %c0_27 = arith.constant 0 : index
    %30 = vector.load %arg5[%c1_25, %c0_26, %c0_27] : memref<2x1x128xf32, #tpu.memory_space<vmem>>, vector<1x1x128xf32>
    %31 = vector.shape_cast %30 : vector<1x1x128xf32> to vector<1x128xf32>
    %32 = vector.broadcast %31 : vector<1x128xf32> to vector<8x128xf32>
    %33 = arith.addf %29, %32 : vector<8x128xf32>
    %c0_28 = arith.constant 0 : index
    %c0_29 = arith.constant 0 : index
    %34 = vector.load %arg6[%c0_28, %c0_29] : memref<8x256xf32, #tpu.memory_space<vmem>>, vector<8x128xf32>
    tpu.vector_store %arg6[%c0_28, %c0_29], %27 {strides = array<i32>} : memref<8x256xf32, #tpu.memory_space<vmem>>, vector<8x128xf32>,
    %c0_30 = arith.constant 0 : index
    %c128_31 = arith.constant 128 : index
    %35 = vector.load %arg6[%c0_30, %c128_31] : memref<8x256xf32, #tpu.memory_space<vmem>>, vector<8x128xf32>
    tpu.vector_store %arg6[%c0_30, %c128_31], %33 {strides = array<i32>} : memref<8x256xf32, #tpu.memory_space<vmem>>, vector<8x128xf32>,
    return
  }
  func.func @transform_0(%arg0: i32) -> (i32, i32) {
    %c0_i32 = arith.constant 0 : i32
    %c0_i32_0 = arith.constant 0 : i32
    return %arg0, %c0_i32 : i32, i32
  }
  func.func @transform_1(%arg0: i32) -> (i32, i32, i32) {
    %c0_i32 = arith.constant 0 : i32
    %c0_i32_0 = arith.constant 0 : i32
    %c0_i32_1 = arith.constant 0 : i32
    %c0_i32_2 = arith.constant 0 : i32
    return %c0_i32, %c0_i32_0, %c0_i32_1 : i32, i32, i32
  }
  func.func @transform_2(%arg0: i32) -> (i32, i32, i32) {
    %c0_i32 = arith.constant 0 : i32
    %c0_i32_0 = arith.constant 0 : i32
    %c0_i32_1 = arith.constant 0 : i32
    %c0_i32_2 = arith.constant 0 : i32
    return %c0_i32, %c0_i32_0, %c0_i32_1 : i32, i32, i32
  }
  func.func @transform_3(%arg0: i32) -> (i32, i32, i32) {
    %c0_i32 = arith.constant 0 : i32
    %c0_i32_0 = arith.constant 0 : i32
    %c0_i32_1 = arith.constant 0 : i32
    %c0_i32_2 = arith.constant 0 : i32
    return %c0_i32, %c0_i32_0, %c0_i32_1 : i32, i32, i32
  }
  func.func @transform_4(%arg0: i32) -> (i32, i32, i32) {
    %c0_i32 = arith.constant 0 : i32
    %c0_i32_0 = arith.constant 0 : i32
    %c0_i32_1 = arith.constant 0 : i32
    %c0_i32_2 = arith.constant 0 : i32
    return %c0_i32, %c0_i32_0, %c0_i32_1 : i32, i32, i32
  }
  func.func @transform_5(%arg0: i32) -> (i32, i32) {
    %c0_i32 = arith.constant 0 : i32
    %c0_i32_0 = arith.constant 0 : i32
    return %arg0, %c0_i32 : i32, i32
  }
}

</mosaic_0001>

<bundles_post_ra>
// kernel: tpu_custom_call.1
= control target key start
LH: loop header
LB: loop body
LE: loop exit
PB: predicated region body
PF: predicated region fallthrough
CT: control target
= control target key end

     0   :  { %10 = vsyncpa [#allocation3], 0  ;;  %s1654_s0 = inlined_call_operand.hbm [shape: f32[16,256], index: 0, kind: input, shape index: {}]   ;;  %s1655_s1 = inlined_call_operand.hbm [shape: f32[2,128,128], index: 1, kind: input, shape index: {}]   ;;  %s1656_s2 = inlined_call_operand.vmem [shape: f32[2,1,128], index: 2, kind: input, shape index: {}]   ;;  %s1657_s3 = inlined_call_operand.hbm [shape: f32[2,128,128], index: 3, kind: input, shape index: {}]   ;;  %s1658_s4 = inlined_call_operand.vmem [shape: f32[2,1,128], index: 4, kind: input, shape index: {}]   ;;  %s1659_s5 = inlined_call_operand.hbm [shape: f32[16,256], index: 5, kind: output, shape index: {}]  }
   0x1   :  { %12 = vsyncpa [#allocation3 + $0x1], 0 }
   0x2   :  { %13 = vsyncpa [#allocation6], 0 }
   0x3   :  { %14 = vsyncpa [#allocation4], 0 }
   0x4   :  { %16 = vsyncpa [#allocation4 + $0x1], 0  ;;  %s1361_s18 = smov 0   ;;  %s1363_s19 = smov 0  }
   0x5   :  { %s1365_s20 = smov 0   ;;  %s1367_s21 = smov 0  }
   0x6 LB: > { %s1382_s22 = sadd.s32 4294967295, %s1320_s21   ;;  %s762_s23 = sadd.s32 4294967294, %s1320_s21   ;;  %s1320_s21 = sphi %s1367_s21, %s1679_s21   ;;  %s1316_s20 = sphi %s1365_s20, %s1678_s20   ;;  %s1312_s19 = sphi %s1363_s19, %s1677_s19   ;;  %s1308_s18 = sphi %s1361_s18, %s1676_s18  }
   0x7   : > { %p42_p0 = scmp.ne.s32.totalorder %s1312_s19, %s1308_s18  ;;  %p1660_p1 = scmp.eq.s32.totalorder %s1382_s22, 0 }
   0x8   : > { %p156_p3 = scmp.eq.s32.totalorder %s762_s23, 1  ;;  %p763_p5 = scmp.ge.s32.totalorder %s1320_s21, 1 }
   0x9   : > { %p1391_p4 = por %p1660_p1, %p42_p0  ;;  %p163_p7 = scmp.lt.s32.totalorder %s1320_s21, 3 }
   0xa   : > { %p1396_p6 = por %p156_p3, %p42_p0  ;;  %s1322_s27 = smov [#allocation5]  }
   0xb   : > { %s1663_s24 = scalar_select %p1391_p4, 1, 0 }
   0xc   : > { %s1664_s25 = scalar_select %p1396_p6, 1, 0 }
   0xd   : > { %p1401_p8 = pnand %p763_p5, %p163_p7  ;;  %s175_s28 = sshll.u32 %s1322_s27, 4  ;;  %s1405_s28 = int_to_ptr.vmem [resolvable:$true] %s175_s28 }
   0xe   : > { %s1323_s30 = smov [#allocation7]   ;;  %s1164_s9 = scalar_lea.hbm %s1655_s1, 4096 }
   0xf   : > { %p1104_p9 = pneg %p1401_p8  ;;  %s191_s6 = sshll.u32 %s1323_s30, 4  ;;  %s1416_s6 = int_to_ptr.vmem [resolvable:$true] %s191_s6 }
  0x10   : > { %p1165_p12 = scmp.ne.s32.totalorder %s1655_s1, %s1164_s9  ;;  %p1171_p5 = scmp.lt.u32.totalorder %s1164_s9, %s1655_s1 }
  0x11   : > { %p1412_p11 = pnand %p1104_p9, %p1660_p1 }
  0x13   : > { %p1166_p13 = pneg %p1412_p11 }
  0x15   : > { %p1167_p0 = pnand %p1166_p13, %p1165_p12 }
  0x17   : > { %p1168_p3 = pneg %p1167_p0 }
  0x19   : > { %p1173_p7 = pnand %p1171_p5, %p1168_p3 }
  0x1b   : > { %1176 = shalt.err (!%p1173_p7)
}
  0x1c   : > { %s1177_s14 = scalar_lea.vmem %s1405_s28, 4096  ;;  %p1185_p2 = scmp.lt.s32.totalorder %s1405_s28, %s1405_s28 }
  0x1d   : > { %p1178_p9 = scmp.ne.s32.totalorder %s1405_s28, %s1177_s14  ;;  %p1186_p12 = scmp.lt.s32.totalorder %s1177_s14, %s1177_s14 }
  0x1f   : > { %p1180_p10 = pnand %p1178_p9, %p1166_p13  ;;  %p1187_p0 = por %p1186_p12, %p1185_p2 }
  0x21   : > { %p1181_p1 = pneg %p1180_p10 }
  0x23   : > { %p1188_p6 = pnand %p1187_p0, %p1181_p1 }
  0x25   : > { %1191 = shalt.err (!%p1188_p6)
}
  0x26   : > { %s1324_s15 = smov 128   ;;  %s1325_s16 = smov 8  }
  0x27   : > { %1107 = dma.hbm_to_vmem [thread:$0]  (!%p1412_p11), %s1655_s1, 4096, %s1405_s28, [#allocation6], %s1324_s15, %s1324_s15, %s1325_s16  }
  0x28   : > { %s1192_s7 = scalar_lea.hbm %s1657_s3, 4096 }
  0x29   : > { %p1193_p2 = scmp.ne.s32.totalorder %s1657_s3, %s1192_s7  ;;  %p1199_p10 = scmp.lt.u32.totalorder %s1192_s7, %s1657_s3 }
  0x2b   : > { %p1195_p1 = pnand %p1193_p2, %p1166_p13 }
  0x2d   : > { %p1196_p6 = pneg %p1195_p1 }
  0x2f   : > { %p1201_p3 = pnand %p1199_p10, %p1196_p6 }
  0x31   : > { %1204 = shalt.err (!%p1201_p3)
}
  0x32   : > { %s1205_s28 = scalar_lea.vmem %s1416_s6, 4096  ;;  %p1213_p12 = scmp.lt.s32.totalorder %s1416_s6, %s1416_s6 }
  0x33   : > { %p1206_p5 = scmp.ne.s32.totalorder %s1416_s6, %s1205_s28  ;;  %p1214_p0 = scmp.lt.s32.totalorder %s1205_s28, %s1205_s28 }
  0x35   : > { %p1208_p7 = pnand %p1206_p5, %p1166_p13  ;;  %p1215_p2 = por %p1214_p0, %p1213_p12 }
  0x37   : > { %p1209_p9 = pneg %p1208_p7 }
  0x39   : > { %p1216_p1 = pnand %p1215_p2, %p1209_p9 }
  0x3b   : > { %1219 = shalt.err (!%p1216_p1)
}
  0x3c   : > { %1110 = dma.hbm_to_vmem [thread:$0]  (!%p1412_p11), %s1657_s3, 4096, %s1416_s6, [#allocation6], %s1324_s15, %s1324_s15, %s1325_s16  }
  0x3d   : > { %s1471_s14 = sadd.s32 1, %s1320_s21   ;;  %s29_s29 = sadd.s32 1, %s1316_s20 }
  0x3e   : > { %s26_s17 = ssub.s32 %s1320_s21, %s1471_s14  ;;  %p36_p13 = scmp.ne.s32.totalorder %s1316_s20, %s1312_s19 }
  0x3f   : > { %p27_p6 = scmp.eq.s32.totalorder %s26_s17, 0  ;;  %p37_p10 = scmp.eq.s32.totalorder %s1320_s21, 0 }
  0x40   : > { %p1667_p3 = scmp.eq.s32.totalorder %s1382_s22, 1  ;;  %p1121_p7 = scmp.lt.s32.totalorder %s1320_s21, 2 }
  0x41   : > { %s1487_s27 = scalar_select %p27_p6, %s1316_s20, %s29_s29  }
  0x42   : > { %p1481_p5 = por %p1667_p3, %p36_p13  ;;  %p38_p9 = por %p37_p10, %p36_p13 }
  0x43   : > { %s208_s30 = sand.u32 1, %s1316_s20   ;;  %s786_s6 = sshll.u32 %s1320_s21, 8 }
  0x44   : > { %s1668_s23 = scalar_select %p1481_p5, 1, 0 }
  0x45   : > { %s767_s7 = sshll.u32 %s208_s30, 4  ;;  %s1494_s8 = scalar_lea.hbm %s1654_s0, %s786_s6 }
  0x46   : > { %s212_s9 = scalar_lea.vmem [#allocation2], %s767_s7  ;;  %p1498_p11 = pnand %p1121_p7, %p38_p9 }
  0x47   : > { %s220_s10 = sshll.u32 %s212_s9, 4  ;;  %s209_s28 = scalar_lea.sflag [#allocation3], %s208_s30  ;;  %s1496_s10 = int_to_ptr.vmem [resolvable:$true] %s220_s10 }
  0x48   : > { %s1220_s12 = scalar_lea.hbm %s1494_s8, 256  ;;  %p1222_p0 = pneg %p1498_p11 }
  0x49   : > { %p1221_p12 = scmp.ne.s32.totalorder %s1494_s8, %s1220_s12  ;;  %s1225_s17 = scalar_lea.hbm %s1654_s0, 512 }
  0x4a   : > { %p1226_p13 = scmp.lt.u32.totalorder %s1494_s8, %s1654_s0  ;;  %p1227_p6 = scmp.lt.u32.totalorder %s1225_s17, %s1220_s12 }
  0x4b   : > { %p1223_p2 = pnand %p1222_p0, %p1221_p12  ;;  %p1229_p3 = scmp.lt.u32.totalorder %s1220_s12, %s1494_s8 }
  0x4c   : > { %p1228_p10 = por %p1227_p6, %p1226_p13 }
  0x4d   : > { %p1224_p1 = pneg %p1223_p2 }
  0x4e   : > { %p1230_p7 = por %p1229_p3, %p1228_p10 }
  0x50   : > { %p1231_p9 = pnand %p1230_p7, %p1224_p1 }
  0x52   : > { %1234 = shalt.err (!%p1231_p9)
}
  0x53   : > { %s1235_s30 = scalar_lea.vmem %s1496_s10, 256  ;;  %s1326_s15 = smov [#allocation2]  }
  0x54   : > { %p1236_p12 = scmp.ne.s32.totalorder %s1496_s10, %s1235_s30  ;;  %s1240_s16 = sshll.u32 %s1326_s15, 4  ;;  %s1241_s16 = int_to_ptr.vmem [resolvable:$false] %s1240_s16 }
  0x55   : > { %s1242_s9 = scalar_lea.vmem %s1241_s16, 512  ;;  %p1243_p4 = scmp.lt.s32.totalorder %s1496_s10, %s1241_s16 }
  0x56   : > { %p1238_p2 = pnand %p1236_p12, %p1222_p0  ;;  %p1244_p13 = scmp.lt.s32.totalorder %s1242_s9, %s1235_s30 }
  0x58   : > { %p1239_p5 = pneg %p1238_p2  ;;  %p1245_p6 = por %p1244_p13, %p1243_p4 }
  0x5a   : > { %p1246_p10 = pnand %p1245_p6, %p1239_p5 }
  0x5c   : > { %1249 = shalt.err (!%p1246_p10)
}
  0x5d   : > { %1114 = dma.hbm_to_vmem [thread:$0]  (!%p1498_p11), %s1494_s8, 256, %s1496_s10, %s209_s28  }
  0x5e   : > { %229 = sbr.rel (%p1401_p8) target bundleno = 1017 (0x3f9), region = 40  ;;  %s1530_s12 = sand.u32 (!%p1401_p8), 1, %s1312_s19  }
  0x5f   : > { %s771_s13 = sshll.u32 (!%p1401_p8), %s1530_s12, 4  ;;  %s232_s29 = scalar_lea.sflag (!%p1401_p8), [#allocation3], %s1530_s12 }
  0x60   : > { %s1536_s17 = scalar_lea.vmem (!%p1401_p8), [#allocation2], %s771_s13  ;;  %p1670_p4 = scmp.ne.s32.totalorder (!%p1401_p8), %s1663_s24, 0 }
  0x65   : > { %1295 = dma.done.wait (%p1670_p4), %s232_s29, 256  }
  0x66   : > { %1297 = vsyncadd (%p1670_p4), %s232_s29, 4294967040  ;;  %p1671_p5 = scmp.eq.s32.totalorder %s1382_s22, 0 }
  0x68   : > { %1299 = dma.done.wait (%p1671_p5), [#allocation6], 8192   ;;  %p1672_p8 = pmov %p1671_p5 }
  0x69   : > { %v1327_v0 = vmov 0.0|0.0   ;;  %vm1328_vm0 = vmmov 0   ;;  %v1329_v1 = vmov 0.0   ;;  %v272_v2 = vld [vmem:[#allocation5] sm:$0xff]  ;;  %v273_v3 = vld [vmem:[#allocation5 + $0x8] sm:$0xff]  ;;  %v274_v4 = vld [vmem:[#allocation5 + $0x10] sm:$0xff] }
  0x6a   : > { %1301 = vsyncadd (%p1672_p8), [#allocation6], 4294959104  ;;  %996 = vmatprep.subr.bf16.mxu0 %v1327_v0  ;;  %888 = vmatprep.mubr.msk.f32.mxu0 %vm1328_vm0, %v1329_v1  ;;  %v997_v5 = vpack.c.bf16 %v273_v3, %v272_v2  ;;  %v275_v6 = vld [vmem:[#allocation5 + $0x18] sm:$0xff]  ;;  %v276_v8 = vld [vmem:[#allocation5 + $0x20] sm:$0xff]  ;;  %s269_s7 = scalar_lea.vmem [#allocation8], %s771_s13  ;;  %s787_s15 = sshll.u32 %s1382_s22, 8 }
  0x6b   : > { %1020 = vmatprep.subr.bf16.mxu1 %v1327_v0  ;;  %923 = vmatprep.mubr.msk.f32.mxu1 %vm1328_vm0, %v1329_v1  ;;  %v1000_v7 = vpack.c.bf16 %v275_v6, %v274_v4  ;;  %v277_v9 = vld [vmem:[#allocation5 + $0x28] sm:$0xff]  ;;  %v288_v10 = vld [vmem:[#allocation7] sm:$0xff]  ;;  %v290_v12 = vld [vmem:[#allocation7 + $0x10] sm:$0xff]  ;;  %s673_s16 = sshll.u32 %s269_s7, 4  ;;  %s659_s13 = scalar_lea.sflag [#allocation4], %s1530_s12  ;;  %s1612_s16 = int_to_ptr.vmem [resolvable:$true] %s673_s16 }
  0x6c   : > { %998 = vmatpush3.bf16.msra.mxu0 %v997_v5  ;;  %v289_v11 = vld [vmem:[#allocation7 + $0x8] sm:$0xff]  ;;  %v291_v13 = vld [vmem:[#allocation7 + $0x18] sm:$0xff]  ;;  %v1003_v14 = vpack.c.bf16 %v277_v9, %v276_v8  ;;  %v278_v16 = vld [vmem:[#allocation5 + $0x30] sm:$0xff]  ;;  %s1250_s24 = scalar_lea.vmem %s1612_s16, 256  ;;  %p1673_p0 = scmp.ne.s32.totalorder %s1668_s23, 0 }
  0x6d   : > { %999 = vmatprep.subr.bf16.mxu0 %v1327_v0  ;;  %v1021_v15 = vpack.c.bf16 %v289_v11, %v288_v10  ;;  %v279_v17 = vld [vmem:[#allocation5 + $0x38] sm:$0xff]  ;;  %v1024_v18 = vpack.c.bf16 %v291_v13, %v290_v12  ;;  %v292_v19 = vld [vmem:[#allocation7 + $0x20] sm:$0xff]  ;;  %v293_v20 = vld [vmem:[#allocation7 + $0x28] sm:$0xff]  ;;  %p1251_p11 = scmp.ne.s32.totalorder %s1612_s16, %s1250_s24  ;;  %s1330_s22 = smov [#allocation8]  }
  0x6e   : > { %v1006_v21 = vpack.c.bf16 %v279_v17, %v278_v16  ;;  %v280_v22 = vld [vmem:[#allocation5 + $0x40] sm:$0xff]  ;;  %v281_v23 = vld [vmem:[#allocation5 + $0x48] sm:$0xff]  ;;  %v1027_v24 = vpack.c.bf16 %v293_v20, %v292_v19  ;;  %v294_v25 = vld [vmem:[#allocation7 + $0x30] sm:$0xff]  ;;  %s1254_s26 = sshll.u32 %s1330_s22, 4  ;;  %s1255_s26 = int_to_ptr.vmem [resolvable:$false] %s1254_s26 }
  0x6f   : > { %1022 = vmatpush3.bf16.msra.mxu1 %v1021_v15  ;;  %v295_v26 = vld [vmem:[#allocation7 + $0x38] sm:$0xff]  ;;  %v1009_v27 = vpack.c.bf16 %v281_v23, %v280_v22  ;;  %v282_v28 = vld [vmem:[#allocation5 + $0x50] sm:$0xff]  ;;  %v296_v31 = vld [vmem:[#allocation7 + $0x40] sm:$0xff]  ;;  %p1252_p1 = pnand %p1251_p11, %p1673_p0  ;;  %s1256_s8 = scalar_lea.vmem %s1255_s26, 512 }
  0x70   : > { %1001 = vmatpush3.bf16.msra.mxu0 %v1000_v7  ;;  %1023 = vmatprep.subr.bf16.mxu1 %v1327_v0  ;;  %v283_v29 = vld [vmem:[#allocation5 + $0x58] sm:$0xff]  ;;  %v1030_v30 = vpack.c.bf16 %v295_v26, %v294_v25  ;;  %v297_v32 = vld [vmem:[#allocation7 + $0x48] sm:$0xff]  ;;  %v284_v34 = vld [vmem:[#allocation5 + $0x60] sm:$0xff]  ;;  %p1257_p7 = scmp.lt.s32.totalorder %s1612_s16, %s1255_s26  ;;  %p1258_p9 = scmp.lt.s32.totalorder %s1256_s8, %s1250_s24 }
  0x71   : > { %1002 = vmatprep.subr.bf16.mxu0 %v1327_v0  ;;  %v1012_v33 = vpack.c.bf16 %v283_v29, %v282_v28  ;;  %v285_v35 = vld [vmem:[#allocation5 + $0x68] sm:$0xff]  ;;  %v1033_v36 = vpack.c.bf16 %v297_v32, %v296_v31  ;;  %v298_v37 = vld [vmem:[#allocation7 + $0x50] sm:$0xff]  ;;  %v299_v38 = vld [vmem:[#allocation7 + $0x58] sm:$0xff]  ;;  %p1253_p3 = pneg %p1252_p1 }
  0x72   : > { %v1015_v39 = vpack.c.bf16 %v285_v35, %v284_v34  ;;  %v286_v40 = vld [vmem:[#allocation5 + $0x70] sm:$0xff]  ;;  %v287_v41 = vld [vmem:[#allocation5 + $0x78] sm:$0xff]  ;;  %v1036_v42 = vpack.c.bf16 %v299_v38, %v298_v37  ;;  %v300_v43 = vld [vmem:[#allocation7 + $0x60] sm:$0xff]  ;;  %p1259_p12 = por %p1258_p9, %p1257_p7 }
  0x73   : > { %1025 = vmatpush3.bf16.msra.mxu1 %v1024_v18  ;;  %v301_v44 = vld [vmem:[#allocation7 + $0x68] sm:$0xff]  ;;  %v1018_v45 = vpack.c.bf16 %v287_v41, %v286_v40  ;;  %v302_v48 = vld [vmem:[#allocation7 + $0x70] sm:$0xff]  ;;  %v303_v49 = vld [vmem:[#allocation7 + $0x78] sm:$0xff] }
  0x74   : > { %1004 = vmatpush3.bf16.msra.mxu0 %v1003_v14  ;;  %1026 = vmatprep.subr.bf16.mxu1 %v1327_v0  ;;  %v1039_v46 = vpack.c.bf16 %v301_v44, %v300_v43  ;;  %v1566_v47 = vld [vmem:[%s1536_s17 + $0x8] sm:$0xff]  ;;  %v1042_v50 = vpack.c.bf16 %v303_v49, %v302_v48  ;;  %v463_v51 = vld [vmem:[#allocation5 + $0x80] sm:$0xff]  ;;  %v465_v53 = vld [vmem:[#allocation5 + $0x90] sm:$0xff]  ;;  %p1260_p2 = pnand %p1259_p12, %p1253_p3 }
  0x75   : > { %1005 = vmatprep.subr.bf16.mxu0 %v1327_v0  ;;  %v464_v52 = vld [vmem:[#allocation5 + $0x88] sm:$0xff]  ;;  %v466_v55 = vld [vmem:[#allocation5 + $0x98] sm:$0xff]  ;;  %v467_v57 = vld [vmem:[#allocation5 + $0xa0] sm:$0xff] }
  0x76   : > { %v1045_v54 = vpack.c.bf16 %v464_v52, %v463_v51  ;;  %v1048_v56 = vpack.c.bf16 %v466_v55, %v465_v53  ;;  %v468_v58 = vld [vmem:[#allocation5 + $0xa8] sm:$0xff]  ;;  %v469_v60 = vld [vmem:[#allocation5 + $0xb0] sm:$0xff]  ;;  %v470_v61 = vld [vmem:[#allocation5 + $0xb8] sm:$0xff] }
  0x77   : > { %1028 = vmatpush3.bf16.msra.mxu1 %v1027_v24  ;;  %v1051_v59 = vpack.c.bf16 %v468_v58, %v467_v57  ;;  %v1054_v62 = vpack.c.bf16 %v470_v61, %v469_v60  ;;  %v471_v63 = vld [vmem:[#allocation5 + $0xc0] sm:$0xff]  ;;  %v472_v2 = vld [vmem:[#allocation5 + $0xc8] sm:$0xff]  ;;  %v473_v4 = vld [vmem:[#allocation5 + $0xd0] sm:$0xff] }
  0x78   : > { %1007 = vmatpush3.bf16.msra.mxu0 %v1006_v21  ;;  %1029 = vmatprep.subr.bf16.mxu1 %v1327_v0  ;;  %v1057_v3 = vpack.c.bf16 %v472_v2, %v471_v63  ;;  %v474_v5 = vld [vmem:[#allocation5 + $0xd8] sm:$0xff]  ;;  %v475_v7 = vld [vmem:[#allocation5 + $0xe0] sm:$0xff]  ;;  %v476_v8 = vld [vmem:[#allocation5 + $0xe8] sm:$0xff] }
  0x79   : > { %1008 = vmatprep.subr.bf16.mxu0 %v1327_v0  ;;  %v1060_v6 = vpack.c.bf16 %v474_v5, %v473_v4  ;;  %v1063_v9 = vpack.c.bf16 %v476_v8, %v475_v7  ;;  %v270_v10 = vld [vmem:[%s1536_s17] sm:$0xff]  ;;  %v478_v17 = vld [vmem:[#allocation5 + $0xf8] sm:$0xff]  ;;  %v481_v20 = vld [vmem:[#allocation7 + $0x88] sm:$0xff]  ;;  %s1610_s17 = scalar_lea.hbm %s1659_s5, %s787_s15 }
  0x7a   : > { %v775_v12 = vld [vmem:[%s1656_s2] ss:$0 sm:$0xff]  ;;  %v477_v16 = vld [vmem:[#allocation5 + $0xf0] sm:$0xff]  ;;  %v483_v23 = vld [vmem:[#allocation7 + $0x98] sm:$0xff] }
  0x7b   : > { %1031 = vmatpush3.bf16.msra.mxu1 %v1030_v30  ;;  %v1066_v18 = vpack.c.bf16 %v478_v17, %v477_v16  ;;  %v480_v19 = vld [vmem:[#allocation7 + $0x80] sm:$0xff]  ;;  %v482_v21 = vld [vmem:[#allocation7 + $0x90] sm:$0xff]  ;;  %v485_v26 = vld [vmem:[#allocation7 + $0xa8] sm:$0xff] }
  0x7c   : > { %1010 = vmatpush3.bf16.msra.mxu0 %v1009_v27  ;;  %1032 = vmatprep.subr.bf16.mxu1 %v1327_v0  ;;  %v1069_v22 = vpack.c.bf16 %v481_v20, %v480_v19  ;;  %v1072_v24 = vpack.c.bf16 %v483_v23, %v482_v21  ;;  %v484_v25 = vld [vmem:[#allocation7 + $0xa0] sm:$0xff]  ;;  %v487_v28 = vld [vmem:[#allocation7 + $0xb8] sm:$0xff]  ;;  %v489_v31 = vld [vmem:[#allocation7 + $0xc8] sm:$0xff] }
  0x7d   : > { %1011 = vmatprep.subr.bf16.mxu0 %v1327_v0  ;;  %v1075_v27 = vpack.c.bf16 %v485_v26, %v484_v25  ;;  %v488_v30 = vld [vmem:[#allocation7 + $0xc0] sm:$0xff]  ;;  %v491_v34 = vld [vmem:[#allocation7 + $0xd8] sm:$0xff]  ;;  %v493_v37 = vld [vmem:[#allocation7 + $0xe8] sm:$0xff] }
  0x7e   : > { %v1081_v32 = vpack.c.bf16 %v489_v31, %v488_v30  ;;  %v776_v40 = vld [vmem:[%s1658_s4] ss:$0 sm:$0xff]  ;;  %v494_v44 = vld [vmem:[#allocation7 + $0xf0] sm:$0xff]  ;;  %v780_v52 = vld [vmem:[%s1658_s4 + $0x1] ss:$0 sm:$0xff] }
  0x7f   : > { %1034 = vmatpush3.bf16.msra.mxu1 %v1033_v36  ;;  %v492_v36 = vld [vmem:[#allocation7 + $0xe0] sm:$0xff] }
  0x80   : > { %1013 = vmatpush3.bf16.msra.mxu0 %v1012_v33  ;;  %1035 = vmatprep.subr.bf16.mxu1 %v1327_v0  ;;  %v490_v33 = vld [vmem:[#allocation7 + $0xd0] sm:$0xff]  ;;  %v1087_v38 = vpack.c.bf16 %v493_v37, %v492_v36 }
  0x81   : > { %1014 = vmatprep.subr.bf16.mxu0 %v1327_v0  ;;  %v1084_v35 = vpack.c.bf16 %v491_v34, %v490_v33 }
  0x83   : > { %1037 = vmatpush3.bf16.msra.mxu1 %v1036_v42 }
  0x84   : > { %1016 = vmatpush3.bf16.msra.mxu0 %v1015_v39  ;;  %1038 = vmatprep.subr.bf16.mxu1 %v1327_v0 }
  0x85   : > { %1017 = vmatprep.subr.bf16.mxu0 %v1327_v0 }
  0x87   : > { %1040 = vmatpush3.bf16.msra.mxu1 %v1039_v46 }
  0x88   : > { %1019 = vmatpush3.bf16.msra.mxu0 %v1018_v45  ;;  %1041 = vmatprep.subr.bf16.mxu1 %v1327_v0  ;;  %v495_v45 = vld [vmem:[#allocation7 + $0xf8] sm:$0xff] }
  0x89   : > { %1044 = vmatprep.subr.bf16.mxu0 %v1327_v0  ;;  %v1090_v46 = vpack.c.bf16 %v495_v45, %v494_v44 }
  0x8b   : > { %889 = vmatmul.mubr.f32.vlgmr.msra.gmra.mrb[0].mxu0 %v1566_v47  ;;  %1043 = vmatpush3.bf16.msra.mxu1 %v1042_v50 }
  0x8c   : > { %958 = vmatprep.mubr.msk.f32.mxu0 %vm1328_vm0, %v1329_v1  ;;  %1068 = vmatprep.subr.bf16.mxu1 %v1327_v0 }
  0x8d   : > { %1046 = vmatpush3.bf16.msra.mxu0 %v1045_v54 }
  0x8e   : > { %1047 = vmatprep.subr.bf16.mxu0 %v1327_v0 }
  0x91   : > { %1049 = vmatpush3.bf16.msra.mxu0 %v1048_v56 }
  0x92   : > { %1050 = vmatprep.subr.bf16.mxu0 %v1327_v0 }
  0x95   : > { %1052 = vmatpush3.bf16.msra.mxu0 %v1051_v59 }
  0x96   : > { %1053 = vmatprep.subr.bf16.mxu0 %v1327_v0 }
  0x99   : > { %1055 = vmatpush3.bf16.msra.mxu0 %v1054_v62 }
  0x9a   : > { %1056 = vmatprep.subr.bf16.mxu0 %v1327_v0 }
  0x9d   : > { %1058 = vmatpush3.bf16.msra.mxu0 %v1057_v3 }
  0x9e   : > { %1059 = vmatprep.subr.bf16.mxu0 %v1327_v0 }
  0xa1   : > { %1061 = vmatpush3.bf16.msra.mxu0 %v1060_v6 }
  0xa2   : > { %1062 = vmatprep.subr.bf16.mxu0 %v1327_v0 }
  0xa5   : > { %1064 = vmatpush3.bf16.msra.mxu0 %v1063_v9 }
  0xa6   : > { %1065 = vmatprep.subr.bf16.mxu0 %v1327_v0 }
  0xa9   : > { %1067 = vmatpush3.bf16.msra.mxu0 %v1066_v18 }
 0x15e   : > { %v370_v11 = vpop.f32.mrb[0].mxu0 }
 0x15f   : > { %v374_v13 = vadd.f32 %v370_v11, %v270_v10  ;;  %v890_v14 = vpop.f32.mrb[1].mxu0 }
 0x161   : > { %v382_v15 = vadd.f32 %v775_v12, %v374_v13 }
 0x163   : > { %924 = vmatmul.mubr.f32.vlgmr.msra.gmra.mrb[0].mxu1 %v382_v15 }
 0x164   : > { %993 = vmatprep.mubr.msk.f32.mxu1 %vm1328_vm0, %v1329_v1  ;;  %1070 = vmatpush3.bf16.msra.mxu1 %v1069_v22  ;;  %v486_v1 = vld [vmem:[#allocation7 + $0xb0] sm:$0xff] }
 0x165   : > { %1071 = vmatprep.subr.bf16.mxu1 %v1327_v0  ;;  %v1078_v29 = vpack.c.bf16 %v487_v28, %v486_v1 }
 0x168   : > { %1073 = vmatpush3.bf16.msra.mxu1 %v1072_v24 }
 0x169   : > { %1074 = vmatprep.subr.bf16.mxu1 %v1327_v0 }
 0x16c   : > { %1076 = vmatpush3.bf16.msra.mxu1 %v1075_v27 }
 0x16d   : > { %1077 = vmatprep.subr.bf16.mxu1 %v1327_v0 }
 0x170   : > { %1079 = vmatpush3.bf16.msra.mxu1 %v1078_v29 }
 0x171   : > { %1080 = vmatprep.subr.bf16.mxu1 %v1327_v0 }
 0x174   : > { %1082 = vmatpush3.bf16.msra.mxu1 %v1081_v32 }
 0x175   : > { %1083 = vmatprep.subr.bf16.mxu1 %v1327_v0 }
 0x178   : > { %1085 = vmatpush3.bf16.msra.mxu1 %v1084_v35 }
 0x179   : > { %1086 = vmatprep.subr.bf16.mxu1 %v1327_v0 }
 0x17c   : > { %1088 = vmatpush3.bf16.msra.mxu1 %v1087_v38 }
 0x17d   : > { %1089 = vmatprep.subr.bf16.mxu1 %v1327_v0  ;;  %v778_v0 = vld [vmem:[%s1656_s2 + $0x1] ss:$0 sm:$0xff] }
 0x180   : > { %1091 = vmatpush3.bf16.msra.mxu1 %v1090_v46 }
 0x236   : > { %v449_v39 = vpop.f32.mrb[0].mxu1 }
 0x237   : > { %v453_v41 = vadd.f32 %v449_v39, %v1566_v47  ;;  %v925_v42 = vpop.f32.mrb[1].mxu1 }
 0x239   : > { %v461_v43 = vadd.f32 %v776_v40, %v453_v41 }
 0x23b   : > { %959 = vmatmul.mubr.f32.vlgmr.msra.gmra.mrb[2].mxu0 %v461_v43 }
 0x30e   : > { %v562_v48 = vpop.f32.mrb[2].mxu0 }
 0x30f   : > { %v566_v49 = vadd.f32 %v562_v48, %v382_v15  ;;  %v960_v50 = vpop.f32.mrb[3].mxu0 }
 0x311   : > { %v575_v51 = vadd.f32 %v778_v0, %v566_v49 }
 0x313   : > { %656 = vst [vmem:[%s269_s7] sm:$0xff] %v575_v51  ;;  %994 = vmatmul.mubr.f32.vlgmr.msra.gmra.mrb[2].mxu1 %v575_v51 }
 0x3e6   : > { %v642_v47 = vpop.f32.mrb[2].mxu1 }
 0x3e7   : > { %v646_v53 = vadd.f32 %v642_v47, %v461_v43  ;;  %v995_v54 = vpop.f32.mrb[3].mxu1 }
 0x3e9   : > { %v655_v55 = vadd.f32 %v780_v52, %v646_v53 }
 0x3eb   : > { %657 = vst [vmem:[%s269_s7 + $0x8] sm:$0xff] %v655_v55 }
 0x3ec   : > { %1263 = shalt.err (!%p1260_p2)
}
 0x3ed   : > { %s1264_s12 = scalar_lea.hbm %s1610_s17, 256  ;;  %s1268_s28 = scalar_lea.hbm %s1659_s5, 512 }
 0x3ee   : > { %p1265_p13 = scmp.ne.s32.totalorder %s1610_s17, %s1264_s12  ;;  %p1269_p4 = scmp.lt.u32.totalorder %s1610_s17, %s1659_s5 }
 0x3ef   : > { %p1270_p5 = scmp.lt.u32.totalorder %s1268_s28, %s1264_s12  ;;  %p1272_p11 = scmp.lt.u32.totalorder %s1264_s12, %s1610_s17 }
 0x3f0   : > { %p1266_p6 = pnand %p1265_p13, %p1673_p0 }
 0x3f1   : > { %p1271_p8 = por %p1270_p5, %p1269_p4 }
 0x3f2   : > { %p1267_p10 = pneg %p1266_p6 }
 0x3f3   : > { %p1273_p1 = por %p1272_p11, %p1271_p8 }
 0x3f5   : > { %p1274_p3 = pnand %p1273_p1, %p1267_p10 }
 0x3f7   : > { %1277 = shalt.err (!%p1274_p3)
}
 0x3f8   : > { %1102 = dma.vmem_to_hbm [thread:$0]  (%p1673_p0), %s1612_s16, 256, %s1610_s17, %s659_s13  }
 0x3f9 PF: > { %s685_s30 = sand.u32 1, %s1308_s18   ;;  %p1674_p7 = scmp.ne.s32.totalorder %s1664_s25, 0 }
 0x3fa   : > { %p1675_p9 = scmp.ge.s32.totalorder %s1320_s21, 2  ;;  %s686_s15 = scalar_lea.sflag [#allocation4], %s685_s30 }
 0x3fc   : > { %p1116_p12 = pnand %p1675_p9, %p1674_p7 }
 0x3fe   : > { %1303 = dma.done.wait (!%p1116_p12), %s686_s15, 256  }
 0x3ff   : > { %1305 = vsyncadd (!%p1116_p12), %s686_s15, 4294967040  ;;  %p19_p2 = scmp.ge.s32.totalorder %s1471_s14, 4   ;;  %s1676_s18 = smov %s1312_s19 }
 0x400   : > { %s1677_s19 = smov %s1316_s20  ;;  %s1678_s20 = smov %s1487_s27 }
 0x401   : > { %s1679_s21 = smov %s1471_s14  ;;  %21 = sbr.rel (!%p19_p2) target bundleno = 6 (0x6), region = 97 }
 0x408   :  { %691 = vsyncpa [#allocation3], 1 }
 0x409   :  { %693 = vsyncpa [#allocation3 + $0x1], 1 }
 0x40a   :  { %694 = vsyncpa [#allocation6], 1 }
 0x40b   :  { %695 = vsyncpa [#allocation4], 1 }
 0x40c   :  { %697 = vsyncpa [#allocation4 + $0x1], 1 }

</bundles_post_ra>
